<compile_context>
chip_gen: v7x
topology: tpu7x:2x2x1
jax: 0.10.0
libtpu: 0.0.40
codegen_flags: <defaults>
</compile_context>

<pallas_src>
import jax
import jax.numpy as jnp
from jax.experimental import pallas as pl
from jax.experimental.pallas import tpu as pltpu

# ---- logical (PyTorch) dimensions -------------------------------------------
D_IN = 128          # flattened input features (encoder input)
ENC_H = 64          # encoder hidden size
ENC_OUT = 64        # encoder_output_size
CLS_H = 32          # classifier_hidden_sizes = [32]
NUM_CLASSES = 10

# ---- MXU / lane-friendly padded dimensions -----------------------------------
H1_P = 128
H2_P = 128
H3_P = 128
OUT_P = 128         # padded N of the last matmul (stays in vregs only)
OUT_STORE = 16      # lanes actually written back to HBM (>= NUM_CLASSES)

TB_MAX = 1024       # max batch-tile rows per grid step
MIN_STEPS = 2       # keep >= 2 grid steps so v7x's 2nd TensorCore gets work


def sae_classifier_kernel(x_ref,
                          we1_ref, be1_ref,   # encoder layer 1
                          we2_ref, be2_ref,   # encoder layer 2
                          wc1_ref, bc1_ref,   # classifier hidden
                          wc2_ref, bc2_ref,   # classifier output
                          out_ref):
    # Cast to bf16 in-kernel (no wrapper-side cast round trip through HBM).
    x = x_ref[...].astype(jnp.bfloat16)              # [tb, D_IN]

    # ---- encoder: Linear + ReLU, Linear + ReLU (bf16 MXU, f32 accumulate) ----
    h = jnp.dot(x, we1_ref[...],
                preferred_element_type=jnp.float32) + be1_ref[...]
    h = jnp.maximum(h, 0.0)

    h = jnp.dot(h.astype(jnp.bfloat16), we2_ref[...],
                preferred_element_type=jnp.float32) + be2_ref[...]
    h = jnp.maximum(h, 0.0)

    # ---- classifier: Linear + LeakyReLU(0.01) + Dropout(identity) + Linear ---
    h = jnp.dot(h.astype(jnp.bfloat16), wc1_ref[...],
                preferred_element_type=jnp.float32) + bc1_ref[...]
    h = jnp.where(h > 0.0, h, 0.01 * h)              # LeakyReLU(0.01)
    # Dropout(p=0.5) is identity in eval mode (inference forward).

    h = jnp.dot(h.astype(jnp.bfloat16), wc2_ref[...],
                preferred_element_type=jnp.float32) + bc2_ref[...]

    # Narrow store: only the first OUT_STORE (=16 >= 10) lanes hit HBM.
    out_ref[...] = h[:, :OUT_STORE].astype(out_ref.dtype)


def _round_up(x, m):
    return ((x + m - 1) // m) * m


def _pick_tb(b, tb_max=TB_MAX, min_steps=MIN_STEPS):
    """Adaptive batch tile: fat tiles, >= min_steps grid steps, small pad tail."""
    b8 = _round_up(b, 8)
    if b8 <= 8 * min_steps:
        return 8
    return min(tb_max, _round_up(pl.cdiv(b8, min_steps), 8))


def sae_classifier_forward(x, kparams, *, tb=None):
    """x: f32 [B, D_IN]; kparams: padded bf16 weights + f32 biases."""
    (we1, be1, we2, be2, wc1, bc1, wc2, bc2) = kparams
    b = x.shape[0]
    if tb is None:
        tb = _pick_tb(b)
    b_pad = pl.cdiv(b, tb) * tb

    xb = x
    if b_pad != b:
        xb = jnp.pad(xb, ((0, b_pad - b), (0, 0)))   # masked tail via zero pad

    grid = (b_pad // tb,)

    def w_spec(shape):
        # Full-array block, same block index for every batch tile -> weights
        # stay resident in VMEM across the whole grid.
        return pl.BlockSpec(shape, lambda i: (0, 0))

    flops = 2 * b_pad * (D_IN * H1_P + H1_P * H2_P + H2_P * H3_P + H3_P * OUT_P)
    weight_bytes = sum(int(p.size) * p.dtype.itemsize for p in kparams)
    bytes_accessed = int(xb.size) * 4 + b_pad * OUT_STORE * 4 + weight_bytes

    out = pl.pallas_call(
        sae_classifier_kernel,
        out_shape=jax.ShapeDtypeStruct((b_pad, OUT_STORE), jnp.float32),
        grid_spec=pltpu.PrefetchScalarGridSpec(
            num_scalar_prefetch=0,
            grid=grid,
            in_specs=[
                pl.BlockSpec((tb, D_IN), lambda i: (i, 0)),
                w_spec((D_IN, H1_P)), w_spec((1, H1_P)),
                w_spec((H1_P, H2_P)), w_spec((1, H2_P)),
                w_spec((H2_P, H3_P)), w_spec((1, H3_P)),
                w_spec((H3_P, OUT_P)), w_spec((1, OUT_P)),
            ],
            out_specs=pl.BlockSpec((tb, OUT_STORE), lambda i: (i, 0)),
        ),
        compiler_params=pltpu.CompilerParams(
            dimension_semantics=("parallel",),
            vmem_limit_bytes=32 * 1024 * 1024),
        cost_estimate=pl.CostEstimate(
            flops=flops, transcendentals=0, bytes_accessed=bytes_accessed),
    )(xb, we1, be1, we2, be2, wc1, bc1, wc2, bc2)

    # Trivial slice: 16-lane f32 slab -> 10 real logits; batch slice is a
    # no-op whenever b is already a tile multiple.
    return out[:b, :NUM_CLASSES]


# ---- parameters ---------------------------------------------------------------
def init_params(key):
    """Deterministic parameter init (Kaiming-ish uniform, like nn.Linear), f32."""
    def linear(key, fan_in, fan_out):
        kw, kb = jax.random.split(key)
        bound = 1.0 / jnp.sqrt(jnp.float32(fan_in))
        w = jax.random.uniform(kw, (fan_in, fan_out), jnp.float32, -bound, bound)
        b = jax.random.uniform(kb, (1, fan_out), jnp.float32, -bound, bound)
        return w, b

    k1, k2, k3, k4 = jax.random.split(key, 4)
    we1, be1 = linear(k1, D_IN, ENC_H)
    we2, be2 = linear(k2, ENC_H, ENC_OUT)
    wc1, bc1 = linear(k3, ENC_OUT, CLS_H)
    wc2, bc2 = linear(k4, CLS_H, NUM_CLASSES)
    return (we1, be1, we2, be2, wc1, bc1, wc2, bc2)


def pad_params_for_kernel(params):
    """Zero-pad narrow dims to 128 and cast weights to bf16 (biases stay f32).

    Zero padding is numerically inert: padded K lanes contribute 0 to the
    accumulation and padded N lanes stay 0 through bias/ReLU/LeakyReLU.
    """
    (we1, be1, we2, be2, wc1, bc1, wc2, bc2) = params

    def pad_w(w, rows, cols):
        w = jnp.pad(w, ((0, rows - w.shape[0]), (0, cols - w.shape[1])))
        return w.astype(jnp.bfloat16)

    def pad_b(b, cols):
        return jnp.pad(b, ((0, 0), (0, cols - b.shape[1]))).astype(jnp.float32)

    return (pad_w(we1, D_IN, H1_P), pad_b(be1, H1_P),
            pad_w(we2, H1_P, H2_P), pad_b(be2, H2_P),
            pad_w(wc1, H2_P, H3_P), pad_b(bc1, H3_P),
            pad_w(wc2, H3_P, OUT_P), pad_b(bc2, OUT_P))


# ---- references ---------------------------------------------------------------
def reference_forward_f32(x, params):
    """Pure-f32 reference with the PyTorch module semantics (eval mode)."""
    (we1, be1, we2, be2, wc1, bc1, wc2, bc2) = params
    h = jnp.maximum(x @ we1 + be1, 0.0)
    h = jnp.maximum(h @ we2 + be2, 0.0)
    h = h @ wc1 + bc1
    h = jnp.where(h > 0.0, h, 0.01 * h)
    return h @ wc2 + bc2


def reference_forward_bf16(x, params):
    """Reference using the same bf16-operand / f32-accumulate math as the kernel."""
    (we1, be1, we2, be2, wc1, bc1, wc2, bc2) = params

    def mm(a, w):
        return jnp.dot(a.astype(jnp.bfloat16), w.astype(jnp.bfloat16),
                       preferred_element_type=jnp.float32)

    h = jnp.maximum(mm(x, we1) + be1, 0.0)
    h = jnp.maximum(mm(h, we2) + be2, 0.0)
    h = mm(h, wc1) + bc1
    h = jnp.where(h > 0.0, h, 0.01 * h)
    return mm(h, wc2) + bc2


if __name__ == "__main__":
    key = jax.random.PRNGKey(0)
    kx, kp = jax.random.split(key)

    B = 256   # small test batch; adaptive tb=128 -> 2 "parallel" grid steps
    x = jax.random.normal(kx, (B, D_IN), jnp.float32)

    params = init_params(kp)                 # f32, logical shapes
    kparams = pad_params_for_kernel(params)  # bf16, 128-padded shapes

    out = sae_classifier_forward(x, kparams)
    out = jax.block_until_ready(out)
    assert out.shape == (B, NUM_CLASSES)

    # Tight check vs. a reference doing identical bf16-MXU / f32-accumulate math.
    ref_bf16 = reference_forward_bf16(x, params)
    assert jnp.allclose(out, ref_bf16, atol=5e-3, rtol=5e-3), "mismatch vs bf16 reference"

    # Loose sanity check vs. the full-f32 PyTorch-semantics reference
    # (tolerance widened because the kernel uses bf16 MXU operands).
    ref_f32 = reference_forward_f32(x, params)
    assert jnp.allclose(out, ref_f32, atol=5e-2, rtol=5e-2), "mismatch vs f32 reference"

    print("KERNEL_OK")
</pallas_src>

<mosaic_0001>
module attributes {stable_mosaic.version = 11 : i64} {
  func.func @sae_classifier_kernel(%arg0: i32, %arg1: memref<128x128xf32, #tpu.memory_space<vmem>>, %arg2: memref<128x128xbf16, #tpu.memory_space<vmem>>, %arg3: memref<1x128xf32, #tpu.memory_space<vmem>>, %arg4: memref<128x128xbf16, #tpu.memory_space<vmem>>, %arg5: memref<1x128xf32, #tpu.memory_space<vmem>>, %arg6: memref<128x128xbf16, #tpu.memory_space<vmem>>, %arg7: memref<1x128xf32, #tpu.memory_space<vmem>>, %arg8: memref<128x128xbf16, #tpu.memory_space<vmem>>, %arg9: memref<1x128xf32, #tpu.memory_space<vmem>>, %arg10: memref<128x16xf32, #tpu.memory_space<vmem>>) attributes {dimension_semantics = [#tpu.dimension_semantics<parallel>], iteration_bounds = array<i64: 2>, scalar_prefetch = 0 : i64, scratch_operands = 0 : i64, tpu.core_type = #tpu.core_type<tc>, window_params = [{transform_indices = @transform_0, window_bounds = array<i64: 128, 128>}, {pipeline_mode = #tpu.pipeline_mode<synchronous>, transform_indices = @transform_1, window_bounds = array<i64: 128, 128>}, {pipeline_mode = #tpu.pipeline_mode<synchronous>, transform_indices = @transform_2, window_bounds = array<i64: 1, 128>}, {pipeline_mode = #tpu.pipeline_mode<synchronous>, transform_indices = @transform_3, window_bounds = array<i64: 128, 128>}, {pipeline_mode = #tpu.pipeline_mode<synchronous>, transform_indices = @transform_4, window_bounds = array<i64: 1, 128>}, {pipeline_mode = #tpu.pipeline_mode<synchronous>, transform_indices = @transform_5, window_bounds = array<i64: 128, 128>}, {pipeline_mode = #tpu.pipeline_mode<synchronous>, transform_indices = @transform_6, window_bounds = array<i64: 1, 128>}, {pipeline_mode = #tpu.pipeline_mode<synchronous>, transform_indices = @transform_7, window_bounds = array<i64: 128, 128>}, {pipeline_mode = #tpu.pipeline_mode<synchronous>, transform_indices = @transform_8, window_bounds = array<i64: 1, 128>}, {transform_indices = @transform_9, window_bounds = array<i64: 128, 16>}]} {
    %c0 = arith.constant 0 : index
    %c0_0 = arith.constant 0 : index
    %0 = vector.load %arg1[%c0, %c0_0] : memref<128x128xf32, #tpu.memory_space<vmem>>, vector<128x128xf32>
    %1 = arith.truncf %0 : vector<128x128xf32> to vector<128x128xbf16>
    %c0_1 = arith.constant 0 : index
    %c0_2 = arith.constant 0 : index
    %2 = vector.load %arg2[%c0_1, %c0_2] : memref<128x128xbf16, #tpu.memory_space<vmem>>, vector<128x128xbf16>
    %cst = arith.constant dense<0.000000e+00> : vector<128x128xf32>
    %3 = tpu.matmul %1, %2, %cst {dimension_numbers = #tpu.dot_dimension_numbers<[1], [0], [0], [1], [0, 0, 1, 1], [], []>} : vector<128x128xbf16>, vector<128x128xbf16>, vector<128x128xf32> -> vector<128x128xf32>
    %c0_3 = arith.constant 0 : index
    %c0_4 = arith.constant 0 : index
    %4 = vector.load %arg3[%c0_3, %c0_4] : memref<1x128xf32, #tpu.memory_space<vmem>>, vector<1x128xf32>
    %5 = vector.broadcast %4 : vector<1x128xf32> to vector<128x128xf32>
    %6 = arith.addf %3, %5 : vector<128x128xf32>
    %cst_5 = arith.constant 0.000000e+00 : f32
    %7 = vector.broadcast %cst_5 : f32 to vector<128x128xf32>
    %8 = arith.maximumf %6, %7 : vector<128x128xf32>
    %9 = arith.truncf %8 : vector<128x128xf32> to vector<128x128xbf16>
    %c0_6 = arith.constant 0 : index
    %c0_7 = arith.constant 0 : index
    %10 = vector.load %arg4[%c0_6, %c0_7] : memref<128x128xbf16, #tpu.memory_space<vmem>>, vector<128x128xbf16>
    %cst_8 = arith.constant dense<0.000000e+00> : vector<128x128xf32>
    %11 = tpu.matmul %9, %10, %cst_8 {dimension_numbers = #tpu.dot_dimension_numbers<[1], [0], [0], [1], [0, 0, 1, 1], [], []>} : vector<128x128xbf16>, vector<128x128xbf16>, vector<128x128xf32> -> vector<128x128xf32>
    %c0_9 = arith.constant 0 : index
    %c0_10 = arith.constant 0 : index
    %12 = vector.load %arg5[%c0_9, %c0_10] : memref<1x128xf32, #tpu.memory_space<vmem>>, vector<1x128xf32>
    %13 = vector.broadcast %12 : vector<1x128xf32> to vector<128x128xf32>
    %14 = arith.addf %11, %13 : vector<128x128xf32>
    %cst_11 = arith.constant 0.000000e+00 : f32
    %15 = vector.broadcast %cst_11 : f32 to vector<128x128xf32>
    %16 = arith.maximumf %14, %15 : vector<128x128xf32>
    %17 = arith.truncf %16 : vector<128x128xf32> to vector<128x128xbf16>
    %c0_12 = arith.constant 0 : index
    %c0_13 = arith.constant 0 : index
    %18 = vector.load %arg6[%c0_12, %c0_13] : memref<128x128xbf16, #tpu.memory_space<vmem>>, vector<128x128xbf16>
    %cst_14 = arith.constant dense<0.000000e+00> : vector<128x128xf32>
    %19 = tpu.matmul %17, %18, %cst_14 {dimension_numbers = #tpu.dot_dimension_numbers<[1], [0], [0], [1], [0, 0, 1, 1], [], []>} : vector<128x128xbf16>, vector<128x128xbf16>, vector<128x128xf32> -> vector<128x128xf32>
    %c0_15 = arith.constant 0 : index
    %c0_16 = arith.constant 0 : index
    %20 = vector.load %arg7[%c0_15, %c0_16] : memref<1x128xf32, #tpu.memory_space<vmem>>, vector<1x128xf32>
    %21 = vector.broadcast %20 : vector<1x128xf32> to vector<128x128xf32>
    %22 = arith.addf %19, %21 : vector<128x128xf32>
    %cst_17 = arith.constant 0.000000e+00 : f32
    %23 = vector.broadcast %cst_17 : f32 to vector<128x128xf32>
    %24 = arith.cmpf ogt, %22, %23 : vector<128x128xf32>
    %cst_18 = arith.constant 0.00999999977 : f32
    %25 = vector.broadcast %cst_18 : f32 to vector<128x128xf32>
    %26 = arith.mulf %25, %22 : vector<128x128xf32>
    %27 = arith.select %24, %22, %26 : vector<128x128xi1>, vector<128x128xf32>
    %28 = arith.truncf %27 : vector<128x128xf32> to vector<128x128xbf16>
    %c0_19 = arith.constant 0 : index
    %c0_20 = arith.constant 0 : index
    %29 = vector.load %arg8[%c0_19, %c0_20] : memref<128x128xbf16, #tpu.memory_space<vmem>>, vector<128x128xbf16>
    %cst_21 = arith.constant dense<0.000000e+00> : vector<128x128xf32>
    %30 = tpu.matmul %28, %29, %cst_21 {dimension_numbers = #tpu.dot_dimension_numbers<[1], [0], [0], [1], [0, 0, 1, 1], [], []>} : vector<128x128xbf16>, vector<128x128xbf16>, vector<128x128xf32> -> vector<128x128xf32>
    %c0_22 = arith.constant 0 : index
    %c0_23 = arith.constant 0 : index
    %31 = vector.load %arg9[%c0_22, %c0_23] : memref<1x128xf32, #tpu.memory_space<vmem>>, vector<1x128xf32>
    %32 = vector.broadcast %31 : vector<1x128xf32> to vector<128x128xf32>
    %33 = arith.addf %30, %32 : vector<128x128xf32>
    %34 = vector.extract_strided_slice %33 {offsets = [0, 0], sizes = [128, 16], strides = [1, 1]} : vector<128x128xf32> to vector<128x16xf32>
    %c0_24 = arith.constant 0 : index
    %c0_25 = arith.constant 0 : index
    %35 = vector.load %arg10[%c0_24, %c0_25] : memref<128x16xf32, #tpu.memory_space<vmem>>, vector<128x16xf32>
    tpu.vector_store %arg10[%c0_24, %c0_25], %34 {strides = array<i32>} : memref<128x16xf32, #tpu.memory_space<vmem>>, vector<128x16xf32>,
    return
  }
  func.func @transform_0(%arg0: i32) -> (i32, i32) {
    %c0_i32 = arith.constant 0 : i32
    %c0_i32_0 = arith.constant 0 : i32
    return %arg0, %c0_i32 : i32, i32
  }
  func.func @transform_1(%arg0: i32) -> (i32, i32) {
    %c0_i32 = arith.constant 0 : i32
    %c0_i32_0 = arith.constant 0 : i32
    %c0_i32_1 = arith.constant 0 : i32
    return %c0_i32, %c0_i32_0 : i32, i32
  }
  func.func @transform_2(%arg0: i32) -> (i32, i32) {
    %c0_i32 = arith.constant 0 : i32
    %c0_i32_0 = arith.constant 0 : i32
    %c0_i32_1 = arith.constant 0 : i32
    return %c0_i32, %c0_i32_0 : i32, i32
  }
  func.func @transform_3(%arg0: i32) -> (i32, i32) {
    %c0_i32 = arith.constant 0 : i32
    %c0_i32_0 = arith.constant 0 : i32
    %c0_i32_1 = arith.constant 0 : i32
    return %c0_i32, %c0_i32_0 : i32, i32
  }
  func.func @transform_4(%arg0: i32) -> (i32, i32) {
    %c0_i32 = arith.constant 0 : i32
    %c0_i32_0 = arith.constant 0 : i32
    %c0_i32_1 = arith.constant 0 : i32
    return %c0_i32, %c0_i32_0 : i32, i32
  }
  func.func @transform_5(%arg0: i32) -> (i32, i32) {
    %c0_i32 = arith.constant 0 : i32
    %c0_i32_0 = arith.constant 0 : i32
    %c0_i32_1 = arith.constant 0 : i32
    return %c0_i32, %c0_i32_0 : i32, i32
  }
  func.func @transform_6(%arg0: i32) -> (i32, i32) {
    %c0_i32 = arith.constant 0 : i32
    %c0_i32_0 = arith.constant 0 : i32
    %c0_i32_1 = arith.constant 0 : i32
    return %c0_i32, %c0_i32_0 : i32, i32
  }
  func.func @transform_7(%arg0: i32) -> (i32, i32) {
    %c0_i32 = arith.constant 0 : i32
    %c0_i32_0 = arith.constant 0 : i32
    %c0_i32_1 = arith.constant 0 : i32
    return %c0_i32, %c0_i32_0 : i32, i32
  }
  func.func @transform_8(%arg0: i32) -> (i32, i32) {
    %c0_i32 = arith.constant 0 : i32
    %c0_i32_0 = arith.constant 0 : i32
    %c0_i32_1 = arith.constant 0 : i32
    return %c0_i32, %c0_i32_0 : i32, i32
  }
  func.func @transform_9(%arg0: i32) -> (i32, i32) {
    %c0_i32 = arith.constant 0 : i32
    %c0_i32_0 = arith.constant 0 : i32
    return %arg0, %c0_i32 : i32, i32
  }
}

</mosaic_0001>

<bundles_post_ra>
// kernel: tpu_custom_call.1
= control target key start
LH: loop header
LB: loop body
LE: loop exit
PB: predicated region body
PF: predicated region fallthrough
CT: control target
= control target key end

     0   :  { %s2269_s0 = inlined_call_operand.hbm [shape: f32[256,128], index: 0, kind: input, shape index: {}]   ;;  %s2270_s1 = inlined_call_operand.hbm [shape: bf16[128,128], index: 1, kind: input, shape index: {}]   ;;  %s2271_s2 = inlined_call_operand.vmem [shape: f32[1,128], index: 2, kind: input, shape index: {}]   ;;  %s2272_s3 = inlined_call_operand.hbm [shape: bf16[128,128], index: 3, kind: input, shape index: {}]   ;;  %s2273_s4 = inlined_call_operand.vmem [shape: f32[1,128], index: 4, kind: input, shape index: {}]   ;;  %s2274_s5 = inlined_call_operand.hbm [shape: bf16[128,128], index: 5, kind: input, shape index: {}]   ;;  %s2275_s6 = inlined_call_operand.vmem [shape: f32[1,128], index: 6, kind: input, shape index: {}]   ;;  %s2276_s7 = inlined_call_operand.hbm [shape: bf16[128,128], index: 7, kind: input, shape index: {}]   ;;  %s2277_s8 = inlined_call_operand.vmem [shape: f32[1,128], index: 8, kind: input, shape index: {}]   ;;  %s2278_s9 = inlined_call_operand.vmem [shape: f32[256,16], index: 9, kind: output, shape index: {}]  }
   0x1   :  { %2284 = sst [smem:[#allocation13_spill]] %s2278_s9 }
   0x2   :  { %14 = vsyncpa [#allocation3], 0 }
   0x3   :  { %16 = vsyncpa [#allocation3 + $0x1], 0 }
   0x4   :  { %17 = vsyncpa [#allocation5], 0 }
   0x5   :  { %18 = vsyncpa [#allocation8], 0  ;;  %s1947_s30 = smov 0   ;;  %s1949_s10 = smov 0  }
   0x6   :  { %s1951_s11 = smov 0   ;;  %s1953_s12 = smov 0  }
   0x7 LB: > { %s2281_s13 = sadd.s32 4294967295, %s1886_s12   ;;  %p44_p0 = scmp.ne.s32.totalorder %s1878_s10, %s1874_s30  ;;  %s1886_s12 = sphi %s1953_s12, %s2299_s12   ;;  %s1882_s11 = sphi %s1951_s11, %s2298_s11   ;;  %s1878_s10 = sphi %s1949_s10, %s2297_s10   ;;  %s1874_s30 = sphi %s1947_s30, %s2296_s30  }
   0x8   : > { %p1969_p1 = scmp.eq.s32.totalorder %s2281_s13, 0  ;;  %p1338_p2 = scmp.ge.s32.totalorder %s1886_s12, 1 }
   0x9   : > { %p249_p3 = scmp.lt.s32.totalorder %s1886_s12, 3  ;;  %s1888_s17 = smov [#allocation4]  }
   0xa   : > { %s2285_s14 = scalar_select %p1969_p1, 1, 0 }
   0xb   : > { %p1977_p4 = por %p1969_p1, %p44_p0  ;;  %p1981_p5 = pnand %p1338_p2, %p249_p3 }
   0xc   : > { %s261_s18 = sshll.u32 %s1888_s17, 4  ;;  %s1889_s20 = smov [#allocation7]   ;;  %s1985_s18 = int_to_ptr.vmem [resolvable:$true] %s261_s18 }
   0xd   : > { %s2286_s15 = scalar_select %p1977_p4, 1, 0 }
   0xe   : > { %s2287_s16 = scalar_select %p1981_p5, 1, 0 }
   0xf   : > { %p1604_p6 = pneg %p1981_p5  ;;  %s293_s21 = sshll.u32 %s1889_s20, 4  ;;  %s1995_s21 = int_to_ptr.vmem [resolvable:$true] %s293_s21 }
  0x10   : > { %s1890_s22 = smov [#allocation6]   ;;  %s1702_s26 = scalar_lea.hbm %s2270_s1, 1024 }
  0x11   : > { %p1991_p7 = pnand %p1604_p6, %p1969_p1  ;;  %s1997_s23 = sshll.u32 %s1890_s22, 4  ;;  %s278_s23 = int_to_ptr.vmem [resolvable:$true] %s1997_s23 }
  0x12   : > { %p1703_p8 = scmp.ne.s32.totalorder %s2270_s1, %s1702_s26  ;;  %p1709_p12 = scmp.lt.u32.totalorder %s1702_s26, %s2270_s1 }
  0x13   : > { %p2007_p9 = pneg %p1991_p7 }
  0x15   : > { %p1705_p10 = pnand %p2007_p9, %p1703_p8 }
  0x17   : > { %p1706_p11 = pneg %p1705_p10 }
  0x19   : > { %p1711_p13 = pnand %p1709_p12, %p1706_p11 }
  0x1b   : > { %1714 = shalt.err (!%p1711_p13)
}
  0x1c   : > { %s1715_s20 = scalar_lea.vmem %s1985_s18, 1024  ;;  %p1723_p6 = scmp.lt.s32.totalorder %s1985_s18, %s1985_s18 }
  0x1d   : > { %p1716_p0 = scmp.ne.s32.totalorder %s1985_s18, %s1715_s20  ;;  %p1724_p1 = scmp.lt.s32.totalorder %s1715_s20, %s1715_s20 }
  0x1f   : > { %p1718_p2 = pnand %p1716_p0, %p2007_p9  ;;  %p1725_p8 = por %p1724_p1, %p1723_p6 }
  0x21   : > { %p1719_p3 = pneg %p1718_p2 }
  0x23   : > { %p1726_p10 = pnand %p1725_p8, %p1719_p3 }
  0x25   : > { %1729 = shalt.err (!%p1726_p10)
}
  0x26   : > { %s1891_s22 = smov 64   ;;  %s1892_s24 = smov 4  }
  0x27   : > { %1607 = dma.hbm_to_vmem [thread:$0]  (!%p1991_p7), %s2270_s1, 1024, %s1985_s18, [#allocation5], %s1891_s22, %s1891_s22, %s1892_s24  }
  0x28   : > { %s1730_s30 = scalar_lea.hbm %s2274_s5, 1024 }
  0x29   : > { %p1731_p1 = scmp.ne.s32.totalorder %s2274_s5, %s1730_s30  ;;  %p1737_p13 = scmp.lt.u32.totalorder %s1730_s30, %s2274_s5 }
  0x2b   : > { %p1733_p11 = pnand %p1731_p1, %p2007_p9 }
  0x2d   : > { %p1734_p12 = pneg %p1733_p11 }
  0x2f   : > { %p1739_p0 = pnand %p1737_p13, %p1734_p12 }
  0x31   : > { %1742 = shalt.err (!%p1739_p0)
}
  0x32   : > { %s1743_s18 = scalar_lea.vmem %s1995_s21, 1024  ;;  %p1751_p8 = scmp.lt.s32.totalorder %s1995_s21, %s1995_s21 }
  0x33   : > { %p1744_p2 = scmp.ne.s32.totalorder %s1995_s21, %s1743_s18  ;;  %p1752_p10 = scmp.lt.s32.totalorder %s1743_s18, %s1743_s18 }
  0x35   : > { %p1746_p3 = pnand %p1744_p2, %p2007_p9  ;;  %p1753_p1 = por %p1752_p10, %p1751_p8 }
  0x37   : > { %p1747_p6 = pneg %p1746_p3 }
  0x39   : > { %p1754_p11 = pnand %p1753_p1, %p1747_p6 }
  0x3b   : > { %1757 = shalt.err (!%p1754_p11)
}
  0x3c   : > { %1613 = dma.hbm_to_vmem [thread:$0]  (!%p1991_p7), %s2274_s5, 1024, %s1995_s21, [#allocation8], %s1891_s22, %s1891_s22, %s1892_s24  }
  0x3d   : > { %s1758_s27 = scalar_lea.hbm %s2272_s3, 1024 }
  0x3e   : > { %p1759_p12 = scmp.ne.s32.totalorder %s2272_s3, %s1758_s27  ;;  %p1765_p2 = scmp.lt.u32.totalorder %s1758_s27, %s2272_s3 }
  0x40   : > { %p1761_p13 = pnand %p1759_p12, %p2007_p9 }
  0x42   : > { %p1762_p0 = pneg %p1761_p13 }
  0x44   : > { %p1767_p3 = pnand %p1765_p2, %p1762_p0 }
  0x46   : > { %1770 = shalt.err (!%p1767_p3)
}
  0x47   : > { %s1771_s18 = scalar_lea.vmem %s278_s23, 1024  ;;  %p1779_p1 = scmp.lt.s32.totalorder %s278_s23, %s278_s23 }
  0x48   : > { %p1772_p6 = scmp.ne.s32.totalorder %s278_s23, %s1771_s18  ;;  %p1780_p11 = scmp.lt.s32.totalorder %s1771_s18, %s1771_s18 }
  0x4a   : > { %p1774_p8 = pnand %p1772_p6, %p2007_p9  ;;  %p1781_p4 = por %p1780_p11, %p1779_p1 }
  0x4c   : > { %p1775_p10 = pneg %p1774_p8 }
  0x4e   : > { %p1782_p5 = pnand %p1781_p4, %p1775_p10 }
  0x50   : > { %1785 = shalt.err (!%p1782_p5)
}
  0x51   : > { %1610 = dma.hbm_to_vmem [thread:$0]  (!%p1991_p7), %s2272_s3, 1024, %s278_s23, [#allocation5], %s1891_s22, %s1891_s22, %s1892_s24  }
  0x52   : > { %s1893_s13 = smov [#allocation9]   ;;  %s1786_s28 = scalar_lea.hbm %s2276_s7, 1024 }
  0x53   : > { %s309_s25 = sshll.u32 %s1893_s13, 4  ;;  %p1787_p4 = scmp.ne.s32.totalorder %s2276_s7, %s1786_s28  ;;  %s310_s25 = int_to_ptr.vmem [resolvable:$true] %s309_s25 }
  0x54   : > { %p1793_p13 = scmp.lt.u32.totalorder %s1786_s28, %s2276_s7 }
  0x55   : > { %p1789_p5 = pnand %p1787_p4, %p2007_p9 }
  0x57   : > { %p1790_p12 = pneg %p1789_p5 }
  0x59   : > { %p1795_p0 = pnand %p1793_p13, %p1790_p12 }
  0x5b   : > { %1798 = shalt.err (!%p1795_p0)
}
  0x5c   : > { %s1799_s23 = scalar_lea.vmem %s310_s25, 1024  ;;  %p1807_p8 = scmp.lt.s32.totalorder %s310_s25, %s310_s25 }
  0x5d   : > { %p1800_p2 = scmp.ne.s32.totalorder %s310_s25, %s1799_s23  ;;  %p1808_p10 = scmp.lt.s32.totalorder %s1799_s23, %s1799_s23 }
  0x5f   : > { %p1802_p3 = pnand %p1800_p2, %p2007_p9  ;;  %p1809_p1 = por %p1808_p10, %p1807_p8 }
  0x61   : > { %p1803_p6 = pneg %p1802_p3 }
  0x63   : > { %p1810_p11 = pnand %p1809_p1, %p1803_p6 }
  0x65   : > { %1813 = shalt.err (!%p1810_p11)
}
  0x66   : > { %1616 = dma.hbm_to_vmem [thread:$0]  (!%p1991_p7), %s2276_s7, 1024, %s310_s25, [#allocation8], %s1891_s22, %s1891_s22, %s1892_s24  }
  0x67   : > { %s2101_s29 = sadd.s32 1, %s1886_s12   ;;  %s31_s19 = sadd.s32 1, %s1882_s11 }
  0x68   : > { %s28_s13 = ssub.s32 %s1886_s12, %s2101_s29  ;;  %p38_p9 = scmp.ne.s32.totalorder %s1882_s11, %s1878_s10 }
  0x69   : > { %p29_p4 = scmp.eq.s32.totalorder %s28_s13, 0  ;;  %p39_p5 = scmp.eq.s32.totalorder %s1886_s12, 0 }
  0x6a   : > { %p1625_p12 = scmp.lt.s32.totalorder %s1886_s12, 2  ;;  %s326_s26 = sand.u32 1, %s1882_s11  }
  0x6b   : > { %s2112_s27 = scalar_select %p29_p4, %s1882_s11, %s31_s19  }
  0x6c   : > { %p40_p13 = por %p39_p5, %p38_p9  ;;  %s1344_s28 = sshll.u32 %s326_s26, 7 }
  0x6d   : > { %s1393_s30 = sshll.u32 %s1886_s12, 11  ;;  %s330_s22 = scalar_lea.vmem [#allocation2], %s1344_s28 }
  0x6e   : > { %s2118_s18 = scalar_lea.hbm %s2269_s0, %s1393_s30  ;;  %s337_s24 = sshll.u32 %s330_s22, 4  ;;  %s2124_s24 = int_to_ptr.vmem [resolvable:$true] %s337_s24 }
  0x6f   : > { %p2120_p7 = pnand %p1625_p12, %p40_p13  ;;  %s2126_s23 = scalar_lea.sflag [#allocation3], %s326_s26 }
  0x70   : > { %s1814_s21 = scalar_lea.hbm %s2118_s18, 2048  ;;  %s1819_s13 = scalar_lea.hbm %s2269_s0, 4096 }
  0x71   : > { %p1815_p0 = scmp.ne.s32.totalorder %s2118_s18, %s1814_s21  ;;  %p1816_p2 = pneg %p2120_p7 }
  0x72   : > { %p1820_p8 = scmp.lt.u32.totalorder %s2118_s18, %s2269_s0  ;;  %p1821_p10 = scmp.lt.u32.totalorder %s1819_s13, %s1814_s21 }
  0x73   : > { %p1817_p3 = pnand %p1816_p2, %p1815_p0  ;;  %p1823_p11 = scmp.lt.u32.totalorder %s1814_s21, %s2118_s18 }
  0x74   : > { %p1822_p1 = por %p1821_p10, %p1820_p8 }
  0x75   : > { %p1818_p6 = pneg %p1817_p3 }
  0x76   : > { %p1824_p9 = por %p1823_p11, %p1822_p1 }
  0x78   : > { %p1825_p4 = pnand %p1824_p9, %p1818_p6 }
  0x7a   : > { %1828 = shalt.err (!%p1825_p4)
}
  0x7b   : > { %s1829_s26 = scalar_lea.vmem %s2124_s24, 2048  ;;  %s1894_s17 = smov [#allocation2]  }
  0x7c   : > { %p1830_p5 = scmp.ne.s32.totalorder %s2124_s24, %s1829_s26  ;;  %s1834_s20 = sshll.u32 %s1894_s17, 4  ;;  %s1835_s20 = int_to_ptr.vmem [resolvable:$false] %s1834_s20 }
  0x7d   : > { %s1836_s22 = scalar_lea.vmem %s1835_s20, 4096  ;;  %p1837_p0 = scmp.lt.s32.totalorder %s2124_s24, %s1835_s20 }
  0x7e   : > { %p1832_p12 = pnand %p1830_p5, %p1816_p2  ;;  %p1838_p3 = scmp.lt.s32.totalorder %s1836_s22, %s1829_s26 }
  0x80   : > { %p1833_p13 = pneg %p1832_p12  ;;  %p1839_p8 = por %p1838_p3, %p1837_p0 }
  0x82   : > { %p1840_p10 = pnand %p1839_p8, %p1833_p13 }
  0x84   : > { %1843 = shalt.err (!%p1840_p10)
}
  0x85   : > { %s1895_s21 = smov 128   ;;  %s1896_s9 = smov 8  }
  0x86   : > { %1620 = dma.hbm_to_vmem [thread:$0]  (!%p2120_p7), %s2118_s18, 2048, %s2124_s24, %s2126_s23, %s1895_s21, %s1895_s21, %s1896_s9  }
  0x87   : > { %p2291_p2 = scmp.ne.s32.totalorder %s2287_s16, 0 }
  0x88   : > { %s351_s19 = sand.u32 (!%p2291_p2), 1, %s1878_s10   ;;  %p2292_p6 = scmp.ne.s32.totalorder (!%p2291_p2), %s2286_s15, 0 }
  0x89   : > { %349 = sbr.rel (%p2291_p2) target bundleno = 1092 (0x444), region = 56  ;;  %s1348_s13 = sshll.u32 (!%p2291_p2), %s351_s19, 7 }
  0x8a   : > { %s352_s28 = scalar_lea.sflag (!%p2291_p2), [#allocation3], %s351_s19  ;;  %s2157_s30 = scalar_lea.vmem (!%p2291_p2), [#allocation2], %s1348_s13 }
  0x90   : > { %1861 = dma.done.wait (%p2292_p6), %s352_s28, 2048  }
  0x91   : > { %1863 = vsyncadd (%p2292_p6), %s352_s28, 4294965248  ;;  %p2293_p1 = scmp.ne.s32.totalorder %s2285_s14, 0 }
  0x93   : > { %1865 = dma.done.wait (%p2293_p1), [#allocation5], 2048  }
  0x94   : > { %1867 = vsyncadd (%p2293_p1), [#allocation5], 4294965248 }
  0x95   : > { %1869 = dma.done.wait (%p2293_p1), [#allocation8], 2048  }
  0x96   : > { %1871 = vsyncadd (%p2293_p1), [#allocation8], 4294965248  ;;  %v1670_v0 = vld [vmem:[#allocation4] sm:$0xff]   ;;  %v1671_v1 = vld [vmem:[#allocation4 + $0x8] sm:$0xff]   ;;  %s2294_s23 = sadd.s32 4294967295, %s1886_s12   ;;  %s2295_s19 = sld [smem:[#allocation13_spill]] }
  0x97   : > { %1458 = vmatprep.subr.bf16.mxu0 %v1670_v0  ;;  %v1672_v2 = vld [vmem:[#allocation4 + $0x10] sm:$0xff]   ;;  %v1673_v3 = vld [vmem:[#allocation4 + $0x18] sm:$0xff]   ;;  %v414_v4 = vld [vmem:[%s2157_s30] sm:$0xff]  ;;  %s1353_s26 = sshll.u32 %s2294_s23, 4 }
  0x98   : > { %1459 = vmatpush3.bf16.msra.mxu0 %v1670_v0  ;;  %v415_v5 = vld [vmem:[%s2157_s30 + $0x8] sm:$0xff]  ;;  %v1674_v7 = vld [vmem:[#allocation4 + $0x20] sm:$0xff]   ;;  %v1680_v11 = vld [vmem:[#allocation6 + $0x10] sm:$0xff]   ;;  %p408_p7 = scmp.lt.s32.totalorder %s1353_s26, 31 }
  0x99   : > { %1460 = vmatprep.subr.bf16.mxu0 %v1671_v1  ;;  %v430_v6 = vpack.c.bf16 %v415_v5, %v414_v4  ;;  %v1678_v8 = vld [vmem:[#allocation6] sm:$0xff]   ;;  %v1679_v9 = vld [vmem:[#allocation6 + $0x8] sm:$0xff]   ;;  %v1676_v12 = vld [vmem:[#allocation4 + $0x30] sm:$0xff]  }
  0x9a   : > { %v1675_v10 = vld [vmem:[#allocation4 + $0x28] sm:$0xff]   ;;  %1490 = vmatprep.subr.bf16.mxu1 %v1678_v8  ;;  %v1681_v13 = vld [vmem:[#allocation6 + $0x18] sm:$0xff]   ;;  %v1682_v15 = vld [vmem:[#allocation6 + $0x20] sm:$0xff]   ;;  %s2301_s26 = smov (!%p408_p7, %s1353_s26), 31 }
  0x9b   : > { %1474 = vmatprep.mubr.bf16.mxu0 %v430_v6  ;;  %1491 = vmatpush3.bf16.msra.mxu1 %v1678_v8  ;;  %v1677_v14 = vld [vmem:[#allocation4 + $0x38] sm:$0xff]   ;;  %v416_v16 = vld [vmem:[%s2157_s30 + $0x10] sm:$0xff]  ;;  %v418_v18 = vld [vmem:[%s2157_s30 + $0x20] sm:$0xff]  ;;  %s1354_s17 = sshll.u32 %s2301_s26, 3 }
  0x9c   : > { %1461 = vmatpush3.bf16.msra.mxu0 %v1671_v1  ;;  %1492 = vmatprep.subr.bf16.mxu1 %v1679_v9  ;;  %v417_v17 = vld [vmem:[%s2157_s30 + $0x18] sm:$0xff]  ;;  %v419_v19 = vld [vmem:[%s2157_s30 + $0x28] sm:$0xff]  ;;  %v420_v23 = vld [vmem:[%s2157_s30 + $0x30] sm:$0xff]  ;;  %s2222_s13 = scalar_lea.vmem %s2295_s19, %s1354_s17 }
  0x9d   : > { %1462 = vmatprep.subr.bf16.mxu0 %v1672_v2  ;;  %v1683_v20 = vld [vmem:[#allocation6 + $0x28] sm:$0xff]   ;;  %v431_v21 = vpack.c.bf16 %v417_v17, %v416_v16  ;;  %v432_v22 = vpack.c.bf16 %v419_v19, %v418_v18  ;;  %v421_v24 = vld [vmem:[%s2157_s30 + $0x38] sm:$0xff]  ;;  %v422_v25 = vld [vmem:[%s2157_s30 + $0x40] sm:$0xff] }
  0x9e   : > { %v423_v26 = vld [vmem:[%s2157_s30 + $0x48] sm:$0xff]  ;;  %v433_v27 = vpack.c.bf16 %v421_v24, %v420_v23  ;;  %v424_v29 = vld [vmem:[%s2157_s30 + $0x50] sm:$0xff]  ;;  %v425_v30 = vld [vmem:[%s2157_s30 + $0x58] sm:$0xff] }
  0x9f   : > { %1493 = vmatpush3.bf16.msra.mxu1 %v1679_v9  ;;  %v434_v28 = vpack.c.bf16 %v423_v26, %v422_v25  ;;  %v426_v31 = vld [vmem:[%s2157_s30 + $0x60] sm:$0xff]  ;;  %v427_v32 = vld [vmem:[%s2157_s30 + $0x68] sm:$0xff]  ;;  %v435_v33 = vpack.c.bf16 %v425_v30, %v424_v29  ;;  %v428_v35 = vld [vmem:[%s2157_s30 + $0x70] sm:$0xff] }
  0xa0   : > { %1463 = vmatpush3.bf16.msra.mxu0 %v1672_v2  ;;  %1494 = vmatprep.subr.bf16.mxu1 %v1680_v11  ;;  %v436_v34 = vpack.c.bf16 %v427_v32, %v426_v31  ;;  %v429_v36 = vld [vmem:[%s2157_s30 + $0x78] sm:$0xff]  ;;  %v1684_v38 = vld [vmem:[#allocation6 + $0x30] sm:$0xff]   ;;  %v1686_v40 = vld [vmem:[#allocation7] sm:$0xff]  }
  0xa1   : > { %1464 = vmatprep.subr.bf16.mxu0 %v1673_v3  ;;  %v437_v37 = vpack.c.bf16 %v429_v36, %v428_v35  ;;  %v1685_v39 = vld [vmem:[#allocation6 + $0x38] sm:$0xff]   ;;  %v1687_v41 = vld [vmem:[#allocation7 + $0x8] sm:$0xff]   ;;  %v1688_v42 = vld [vmem:[#allocation7 + $0x10] sm:$0xff]  }
  0xa2   : > { %v1689_v43 = vld [vmem:[#allocation7 + $0x18] sm:$0xff]   ;;  %v1690_v44 = vld [vmem:[#allocation7 + $0x20] sm:$0xff]   ;;  %v1691_v45 = vld [vmem:[#allocation7 + $0x28] sm:$0xff]  }
  0xa3   : > { %1495 = vmatpush3.bf16.msra.mxu1 %v1680_v11  ;;  %v1355_v46 = vld [vmem:[%s2271_s2] ss:$0 sm:$0xff] }
  0xa4   : > { %1465 = vmatpush3.bf16.msra.mxu0 %v1673_v3  ;;  %1496 = vmatprep.subr.bf16.mxu1 %v1681_v13 }
  0xa5   : > { %1466 = vmatprep.subr.bf16.mxu0 %v1674_v7 }
  0xa7   : > { %1497 = vmatpush3.bf16.msra.mxu1 %v1681_v13 }
  0xa8   : > { %1467 = vmatpush3.bf16.msra.mxu0 %v1674_v7  ;;  %1498 = vmatprep.subr.bf16.mxu1 %v1682_v15 }
  0xa9   : > { %1468 = vmatprep.subr.bf16.mxu0 %v1675_v10 }
  0xab   : > { %1499 = vmatpush3.bf16.msra.mxu1 %v1682_v15 }
  0xac   : > { %1469 = vmatpush3.bf16.msra.mxu0 %v1675_v10  ;;  %1500 = vmatprep.subr.bf16.mxu1 %v1683_v20 }
  0xad   : > { %1470 = vmatprep.subr.bf16.mxu0 %v1676_v12 }
  0xaf   : > { %1501 = vmatpush3.bf16.msra.mxu1 %v1683_v20 }
  0xb0   : > { %1471 = vmatpush3.bf16.msra.mxu0 %v1676_v12  ;;  %1502 = vmatprep.subr.bf16.mxu1 %v1684_v38 }
  0xb1   : > { %1472 = vmatprep.subr.bf16.mxu0 %v1677_v14 }
  0xb3   : > { %1503 = vmatpush3.bf16.msra.mxu1 %v1684_v38 }
  0xb4   : > { %1473 = vmatpush3.bf16.msra.mxu0 %v1677_v14  ;;  %1504 = vmatprep.subr.bf16.mxu1 %v1685_v39 }
  0xb5   : > { %1522 = vmatprep.subr.bf16.mxu0 %v1686_v40 }
  0xb7   : > { %1475 = vmatmul.mubr.bf16.vlgmr.msra.gmra.mrb[0].mxu0 %v431_v21  ;;  %1505 = vmatpush3.bf16.msra.mxu1 %v1685_v39  ;;  %v1692_v39 = vld [vmem:[#allocation7 + $0x30] sm:$0xff]  }
  0xb8   : > { %1478 = vmatprep.mubr.bf16.mxu0 %v432_v22  ;;  %1523 = vmatpush3.bf16.msra.mxu0 %v1686_v40  ;;  %v1693_v40 = vld [vmem:[#allocation7 + $0x38] sm:$0xff]  }
  0xb9   : > { %1524 = vmatprep.subr.bf16.mxu0 %v1687_v41 }
  0xbc   : > { %1525 = vmatpush3.bf16.msra.mxu0 %v1687_v41  ;;  %v1694_v41 = vld [vmem:[#allocation9] sm:$0xff]  }
  0xbd   : > { %1526 = vmatprep.subr.bf16.mxu0 %v1688_v42  ;;  %1554 = vmatprep.subr.bf16.mxu1 %v1694_v41 }
  0xbf   : > { %1479 = vmatmul.mubr.bf16.gmra.mrb[4].mxu0 %v433_v27 }
  0xc0   : > { %1482 = vmatprep.mubr.bf16.mxu0 %v434_v28  ;;  %1527 = vmatpush3.bf16.msra.mxu0 %v1688_v42  ;;  %v1695_v42 = vld [vmem:[#allocation9 + $0x8] sm:$0xff]  }
  0xc1   : > { %1528 = vmatprep.subr.bf16.mxu0 %v1689_v43 }
  0xc4   : > { %1529 = vmatpush3.bf16.msra.mxu0 %v1689_v43  ;;  %v1696_v43 = vld [vmem:[#allocation9 + $0x10] sm:$0xff]  }
  0xc5   : > { %1530 = vmatprep.subr.bf16.mxu0 %v1690_v44 }
  0xc7   : > { %1483 = vmatmul.mubr.bf16.gmra.mrb[8].mxu0 %v435_v33 }
  0xc8   : > { %1486 = vmatprep.mubr.bf16.mxu0 %v436_v34  ;;  %1531 = vmatpush3.bf16.msra.mxu0 %v1690_v44  ;;  %v1697_v44 = vld [vmem:[#allocation9 + $0x18] sm:$0xff]  }
  0xc9   : > { %1532 = vmatprep.subr.bf16.mxu0 %v1691_v45 }
  0xcc   : > { %1533 = vmatpush3.bf16.msra.mxu0 %v1691_v45  ;;  %v1698_v45 = vld [vmem:[#allocation9 + $0x20] sm:$0xff]  }
  0xcd   : > { %1534 = vmatprep.subr.bf16.mxu0 %v1692_v39 }
  0xcf   : > { %1487 = vmatmul.mubr.bf16.gmra.mrb[12].mxu0 %v437_v37 }
  0xd0   : > { %1535 = vmatpush3.bf16.msra.mxu0 %v1692_v39 }
  0xd1   : > { %1536 = vmatprep.subr.bf16.mxu0 %v1693_v40 }
  0xd4   : > { %1537 = vmatpush3.bf16.msra.mxu0 %v1693_v40  ;;  %v1700_v40 = vld [vmem:[#allocation9 + $0x30] sm:$0xff]  }
 0x18a   : > { %v1476_v47 = vpop.f32.mrb[0].mxu0 }
 0x18b   : > { %v552_v48 = vadd.f32 %v1476_v47, %v1355_v46  ;;  %v543_v49 = vpop.f32.mrb[1].mxu0  ;;  %v1364_v47 = vld [vmem:[%s2273_s4] ss:$0 sm:$0xff] }
 0x18c   : > { %v544_v50 = vadd.f32 %v1355_v46, %v543_v49  ;;  %v1477_v51 = vpop.f32.mrb[2].mxu0 }
 0x18d   : > { %v555_v52 = vadd.f32 %v1477_v51, %v1355_v46  ;;  %v546_v53 = vpop.f32.mrb[3].mxu0  ;;  %v608_v55 = vmax.f32 %v552_v48, 0.0 }
 0x18e   : > { %v547_v54 = vadd.f32 %v1355_v46, %v546_v53  ;;  %v606_v57 = vmax.f32 %v544_v50, 0.0 }
 0x18f   : > { %v609_v56 = vmax.f32 %v555_v52, 0.0 }
 0x190   : > { %v607_v58 = vmax.f32 %v547_v54, 0.0 }
 0x191   : > { %v623_v59 = vpack.c.bf16 %v609_v56, %v608_v55 }
 0x192   : > { %v1480_v60 = vpop.f32.mrb[4].mxu0  ;;  %v622_v61 = vpack.c.bf16 %v607_v58, %v606_v57 }
 0x193   : > { %v568_v62 = vadd.f32 %v1480_v60, %v1355_v46  ;;  %v559_v63 = vpop.f32.mrb[5].mxu0 }
 0x194   : > { %v560_v0 = vadd.f32 %v1355_v46, %v559_v63  ;;  %v1481_v1 = vpop.f32.mrb[6].mxu0  ;;  %1506 = vmatprep.mubr.bf16.mxu1 %v622_v61 }
 0x195   : > { %v571_v2 = vadd.f32 %v1481_v1, %v1355_v46  ;;  %v562_v3 = vpop.f32.mrb[7].mxu0  ;;  %1507 = vmatmul.mubr.bf16.vlgmr.msra.gmra.mrb[0].mxu1 %v623_v59  ;;  %v612_v5 = vmax.f32 %v568_v62, 0.0 }
 0x196   : > { %v563_v4 = vadd.f32 %v1355_v46, %v562_v3  ;;  %v610_v7 = vmax.f32 %v560_v0, 0.0  ;;  %1555 = vmatpush3.bf16.msra.mxu1 %v1694_v41  ;;  %v1701_v41 = vld [vmem:[#allocation9 + $0x38] sm:$0xff]  }
 0x197   : > { %v613_v6 = vmax.f32 %v571_v2, 0.0  ;;  %1556 = vmatprep.subr.bf16.mxu1 %v1695_v42 }
 0x198   : > { %v611_v8 = vmax.f32 %v563_v4, 0.0 }
 0x199   : > { %v625_v9 = vpack.c.bf16 %v613_v6, %v612_v5 }
 0x19a   : > { %v624_v10 = vpack.c.bf16 %v611_v8, %v610_v7  ;;  %v1484_v11 = vpop.f32.mrb[8].mxu0  ;;  %1557 = vmatpush3.bf16.msra.mxu1 %v1695_v42  ;;  %v2196_v42 = vld [vmem:[%s2275_s6] ss:$0 sm:$0xff] }
 0x19b   : > { %v584_v12 = vadd.f32 %v1484_v11, %v1355_v46  ;;  %v575_v13 = vpop.f32.mrb[9].mxu0  ;;  %1558 = vmatprep.subr.bf16.mxu1 %v1696_v43 }
 0x19c   : > { %v576_v14 = vadd.f32 %v1355_v46, %v575_v13  ;;  %v1485_v15 = vpop.f32.mrb[10].mxu0  ;;  %1510 = vmatprep.mubr.bf16.mxu1 %v624_v10 }
 0x19d   : > { %v587_v16 = vadd.f32 %v1485_v15, %v1355_v46  ;;  %v578_v17 = vpop.f32.mrb[11].mxu0  ;;  %1511 = vmatmul.mubr.bf16.gmra.mrb[4].mxu1 %v625_v9  ;;  %v616_v19 = vmax.f32 %v584_v12, 0.0 }
 0x19e   : > { %v579_v18 = vadd.f32 %v1355_v46, %v578_v17  ;;  %v614_v21 = vmax.f32 %v576_v14, 0.0  ;;  %1559 = vmatpush3.bf16.msra.mxu1 %v1696_v43 }
 0x19f   : > { %v617_v20 = vmax.f32 %v587_v16, 0.0  ;;  %1560 = vmatprep.subr.bf16.mxu1 %v1697_v44 }
 0x1a0   : > { %v615_v22 = vmax.f32 %v579_v18, 0.0 }
 0x1a1   : > { %v627_v23 = vpack.c.bf16 %v617_v20, %v616_v19 }
 0x1a2   : > { %v626_v24 = vpack.c.bf16 %v615_v22, %v614_v21  ;;  %v1488_v25 = vpop.f32.mrb[12].mxu0  ;;  %1561 = vmatpush3.bf16.msra.mxu1 %v1697_v44 }
 0x1a3   : > { %v600_v26 = vadd.f32 %v1488_v25, %v1355_v46  ;;  %v591_v27 = vpop.f32.mrb[13].mxu0  ;;  %1562 = vmatprep.subr.bf16.mxu1 %v1698_v45 }
 0x1a4   : > { %v592_v28 = vadd.f32 %v1355_v46, %v591_v27  ;;  %v1489_v29 = vpop.f32.mrb[14].mxu0  ;;  %1514 = vmatprep.mubr.bf16.mxu1 %v626_v24 }
 0x1a5   : > { %v603_v30 = vadd.f32 %v1489_v29, %v1355_v46  ;;  %v594_v31 = vpop.f32.mrb[15].mxu0  ;;  %1515 = vmatmul.mubr.bf16.gmra.mrb[8].mxu1 %v627_v23  ;;  %v620_v33 = vmax.f32 %v600_v26, 0.0 }
 0x1a6   : > { %v595_v32 = vadd.f32 %v1355_v46, %v594_v31  ;;  %v618_v35 = vmax.f32 %v592_v28, 0.0  ;;  %v1699_v46 = vld [vmem:[#allocation9 + $0x28] sm:$0xff]   ;;  %1563 = vmatpush3.bf16.msra.mxu1 %v1698_v45 }
 0x1a7   : > { %v621_v34 = vmax.f32 %v603_v30, 0.0  ;;  %1564 = vmatprep.subr.bf16.mxu1 %v1699_v46 }
 0x1a8   : > { %v619_v36 = vmax.f32 %v595_v32, 0.0 }
 0x1a9   : > { %v629_v37 = vpack.c.bf16 %v621_v34, %v620_v33 }
 0x1aa   : > { %v628_v38 = vpack.c.bf16 %v619_v36, %v618_v35  ;;  %1565 = vmatpush3.bf16.msra.mxu1 %v1699_v46 }
 0x1ab   : > { %1566 = vmatprep.subr.bf16.mxu1 %v1700_v40 }
 0x1ac   : > { %1518 = vmatprep.mubr.bf16.mxu1 %v628_v38 }
 0x1ad   : > { %1519 = vmatmul.mubr.bf16.gmra.mrb[12].mxu1 %v629_v37 }
 0x1ae   : > { %1567 = vmatpush3.bf16.msra.mxu1 %v1700_v40 }
 0x1af   : > { %1568 = vmatprep.subr.bf16.mxu1 %v1701_v41 }
 0x1b2   : > { %1569 = vmatpush3.bf16.msra.mxu1 %v1701_v41 }
 0x268   : > { %v1508_v48 = vpop.f32.mrb[0].mxu1 }
 0x269   : > { %v744_v49 = vadd.f32 %v1508_v48, %v1364_v47  ;;  %v735_v50 = vpop.f32.mrb[1].mxu1 }
 0x26a   : > { %v736_v51 = vadd.f32 %v1364_v47, %v735_v50  ;;  %v1509_v52 = vpop.f32.mrb[2].mxu1 }
 0x26b   : > { %v747_v53 = vadd.f32 %v1509_v52, %v1364_v47  ;;  %v738_v54 = vpop.f32.mrb[3].mxu1  ;;  %v800_v56 = vmax.f32 %v744_v49, 0.0 }
 0x26c   : > { %v739_v55 = vadd.f32 %v1364_v47, %v738_v54  ;;  %v798_v58 = vmax.f32 %v736_v51, 0.0 }
 0x26d   : > { %v801_v57 = vmax.f32 %v747_v53, 0.0 }
 0x26e   : > { %v799_v59 = vmax.f32 %v739_v55, 0.0 }
 0x26f   : > { %v815_v60 = vpack.c.bf16 %v801_v57, %v800_v56 }
 0x270   : > { %v814_v61 = vpack.c.bf16 %v799_v59, %v798_v58  ;;  %v1512_v62 = vpop.f32.mrb[4].mxu1 }
 0x271   : > { %v760_v63 = vadd.f32 %v1512_v62, %v1364_v47  ;;  %v751_v0 = vpop.f32.mrb[5].mxu1 }
 0x272   : > { %v752_v1 = vadd.f32 %v1364_v47, %v751_v0  ;;  %v1513_v2 = vpop.f32.mrb[6].mxu1  ;;  %1538 = vmatprep.mubr.bf16.mxu0 %v814_v61 }
 0x273   : > { %v763_v3 = vadd.f32 %v1513_v2, %v1364_v47  ;;  %v754_v4 = vpop.f32.mrb[7].mxu1  ;;  %1539 = vmatmul.mubr.bf16.vlgmr.msra.gmra.mrb[16].mxu0 %v815_v60  ;;  %v804_v6 = vmax.f32 %v760_v63, 0.0 }
 0x274   : > { %v755_v5 = vadd.f32 %v1364_v47, %v754_v4  ;;  %v802_v8 = vmax.f32 %v752_v1, 0.0 }
 0x275   : > { %v805_v7 = vmax.f32 %v763_v3, 0.0 }
 0x276   : > { %v803_v9 = vmax.f32 %v755_v5, 0.0 }
 0x277   : > { %v817_v10 = vpack.c.bf16 %v805_v7, %v804_v6 }
 0x278   : > { %v816_v11 = vpack.c.bf16 %v803_v9, %v802_v8  ;;  %v1516_v12 = vpop.f32.mrb[8].mxu1 }
 0x279   : > { %v776_v13 = vadd.f32 %v1516_v12, %v1364_v47  ;;  %v767_v14 = vpop.f32.mrb[9].mxu1 }
 0x27a   : > { %v768_v15 = vadd.f32 %v1364_v47, %v767_v14  ;;  %v1517_v16 = vpop.f32.mrb[10].mxu1  ;;  %1542 = vmatprep.mubr.bf16.mxu0 %v816_v11 }
 0x27b   : > { %v779_v17 = vadd.f32 %v1517_v16, %v1364_v47  ;;  %v770_v18 = vpop.f32.mrb[11].mxu1  ;;  %1543 = vmatmul.mubr.bf16.gmra.mrb[20].mxu0 %v817_v10  ;;  %v808_v20 = vmax.f32 %v776_v13, 0.0 }
 0x27c   : > { %v771_v19 = vadd.f32 %v1364_v47, %v770_v18  ;;  %v806_v22 = vmax.f32 %v768_v15, 0.0 }
 0x27d   : > { %v809_v21 = vmax.f32 %v779_v17, 0.0 }
 0x27e   : > { %v807_v23 = vmax.f32 %v771_v19, 0.0 }
 0x27f   : > { %v819_v24 = vpack.c.bf16 %v809_v21, %v808_v20 }
 0x280   : > { %v818_v25 = vpack.c.bf16 %v807_v23, %v806_v22  ;;  %v1520_v26 = vpop.f32.mrb[12].mxu1 }
 0x281   : > { %v792_v27 = vadd.f32 %v1520_v26, %v1364_v47  ;;  %v783_v28 = vpop.f32.mrb[13].mxu1 }
 0x282   : > { %v784_v29 = vadd.f32 %v1364_v47, %v783_v28  ;;  %v1521_v30 = vpop.f32.mrb[14].mxu1  ;;  %1546 = vmatprep.mubr.bf16.mxu0 %v818_v25 }
 0x283   : > { %v795_v31 = vadd.f32 %v1521_v30, %v1364_v47  ;;  %v786_v32 = vpop.f32.mrb[15].mxu1  ;;  %1547 = vmatmul.mubr.bf16.gmra.mrb[24].mxu0 %v819_v24  ;;  %v812_v34 = vmax.f32 %v792_v27, 0.0 }
 0x284   : > { %v787_v33 = vadd.f32 %v1364_v47, %v786_v32  ;;  %v810_v36 = vmax.f32 %v784_v29, 0.0 }
 0x285   : > { %v813_v35 = vmax.f32 %v795_v31, 0.0 }
 0x286   : > { %v811_v37 = vmax.f32 %v787_v33, 0.0 }
 0x287   : > { %v821_v38 = vpack.c.bf16 %v813_v35, %v812_v34 }
 0x288   : > { %v820_v39 = vpack.c.bf16 %v811_v37, %v810_v36 }
 0x28a   : > { %1550 = vmatprep.mubr.bf16.mxu0 %v820_v39 }
 0x28b   : > { %1551 = vmatmul.mubr.bf16.gmra.mrb[28].mxu0 %v821_v38 }
 0x346   : > { %v1540_v43 = vpop.f32.mrb[16].mxu0 }
 0x347   : > { %v936_v44 = vadd.f32 %v1540_v43, %v2196_v42  ;;  %v927_v45 = vpop.f32.mrb[17].mxu0 }
 0x348   : > { %v928_v46 = vadd.f32 %v2196_v42, %v927_v45  ;;  %v1541_v47 = vpop.f32.mrb[18].mxu0 }
 0x349   : > { %v1008_v48 = vmul.f32 0.01, %v936_v44  ;;  %v939_v49 = vadd.f32 %v1541_v47, %v2196_v42  ;;  %v930_v50 = vpop.f32.mrb[19].mxu0  ;;  %vm992_vm0 = vcmp.gt.f32.partialorder %v936_v44, 0.0 }
 0x34a   : > { %v1006_v51 = vmul.f32 0.01, %v928_v46  ;;  %v931_v52 = vadd.f32 %v2196_v42, %v930_v50  ;;  %vm990_vm1 = vcmp.gt.f32.partialorder %v928_v46, 0.0 }
 0x34b   : > { %vm993_vm2 = vcmp.gt.f32.partialorder %v939_v49, 0.0  ;;  %v1009_v53 = vmul.f32 0.01, %v939_v49  ;;  %v1024_v55 = vsel %vm992_vm0, %v936_v44, %v1008_v48  ;;  %vm1214_vm0 = vcmask 130048  }
 0x34c   : > { %vm991_vm3 = vcmp.gt.f32.partialorder %v931_v52, 0.0  ;;  %v1007_v54 = vmul.f32 0.01, %v931_v52  ;;  %v1022_v59 = vsel %vm990_vm1, %v928_v46, %v1006_v51 }
 0x34d   : > { %v1025_v56 = vsel %vm993_vm2, %v939_v49, %v1009_v53 }
 0x34e   : > { %v1039_v57 = vpack.c.bf16 %v1025_v56, %v1024_v55  ;;  %v1544_v58 = vpop.f32.mrb[20].mxu0  ;;  %v1023_v60 = vsel %vm991_vm3, %v931_v52, %v1007_v54 }
 0x34f   : > { %v952_v61 = vadd.f32 %v1544_v58, %v2196_v42  ;;  %v943_v62 = vpop.f32.mrb[21].mxu0  ;;  %v1038_v63 = vpack.c.bf16 %v1023_v60, %v1022_v59 }
 0x350   : > { %v944_v0 = vadd.f32 %v2196_v42, %v943_v62  ;;  %v1545_v1 = vpop.f32.mrb[22].mxu0 }
 0x351   : > { %v1012_v2 = vmul.f32 0.01, %v952_v61  ;;  %v955_v3 = vadd.f32 %v1545_v1, %v2196_v42  ;;  %v946_v4 = vpop.f32.mrb[23].mxu0  ;;  %1570 = vmatprep.mubr.bf16.mxu1 %v1038_v63  ;;  %vm996_vm4 = vcmp.gt.f32.partialorder %v952_v61, 0.0 }
 0x352   : > { %v1010_v5 = vmul.f32 0.01, %v944_v0  ;;  %v947_v6 = vadd.f32 %v2196_v42, %v946_v4  ;;  %1571 = vmatmul.mubr.bf16.vlgmr.msra.gmra.mrb[16].mxu1 %v1039_v57  ;;  %vm994_vm5 = vcmp.gt.f32.partialorder %v944_v0, 0.0 }
 0x353   : > { %vm997_vm6 = vcmp.gt.f32.partialorder %v955_v3, 0.0  ;;  %v1013_v7 = vmul.f32 0.01, %v955_v3  ;;  %v1028_v9 = vsel %vm996_vm4, %v952_v61, %v1012_v2 }
 0x354   : > { %vm995_vm7 = vcmp.gt.f32.partialorder %v947_v6, 0.0  ;;  %v1011_v8 = vmul.f32 0.01, %v947_v6  ;;  %v1026_v12 = vsel %vm994_vm5, %v944_v0, %v1010_v5 }
 0x355   : > { %v1029_v10 = vsel %vm997_vm6, %v955_v3, %v1013_v7 }
 0x356   : > { %v1548_v11 = vpop.f32.mrb[24].mxu0  ;;  %v1027_v13 = vsel %vm995_vm7, %v947_v6, %v1011_v8  ;;  %v1041_v14 = vpack.c.bf16 %v1029_v10, %v1028_v9 }
 0x357   : > { %v968_v15 = vadd.f32 %v1548_v11, %v2196_v42  ;;  %v959_v16 = vpop.f32.mrb[25].mxu0  ;;  %v1040_v17 = vpack.c.bf16 %v1027_v13, %v1026_v12 }
 0x358   : > { %v960_v18 = vadd.f32 %v2196_v42, %v959_v16  ;;  %v1549_v19 = vpop.f32.mrb[26].mxu0 }
 0x359   : > { %v1016_v20 = vmul.f32 0.01, %v968_v15  ;;  %v971_v21 = vadd.f32 %v1549_v19, %v2196_v42  ;;  %v962_v22 = vpop.f32.mrb[27].mxu0  ;;  %1574 = vmatprep.mubr.bf16.mxu1 %v1040_v17  ;;  %vm1000_vm8 = vcmp.gt.f32.partialorder %v968_v15, 0.0 }
 0x35a   : > { %v1014_v23 = vmul.f32 0.01, %v960_v18  ;;  %v963_v24 = vadd.f32 %v2196_v42, %v962_v22  ;;  %1575 = vmatmul.mubr.bf16.gmra.mrb[20].mxu1 %v1041_v14  ;;  %vm998_vm9 = vcmp.gt.f32.partialorder %v960_v18, 0.0 }
 0x35b   : > { %vm1001_vm10 = vcmp.gt.f32.partialorder %v971_v21, 0.0  ;;  %v1017_v25 = vmul.f32 0.01, %v971_v21  ;;  %v1032_v27 = vsel %vm1000_vm8, %v968_v15, %v1016_v20 }
 0x35c   : > { %vm999_vm11 = vcmp.gt.f32.partialorder %v963_v24, 0.0  ;;  %v1015_v26 = vmul.f32 0.01, %v963_v24  ;;  %v1030_v30 = vsel %vm998_vm9, %v960_v18, %v1014_v23 }
 0x35d   : > { %v1033_v28 = vsel %vm1001_vm10, %v971_v21, %v1017_v25 }
 0x35e   : > { %v1552_v29 = vpop.f32.mrb[28].mxu0  ;;  %v1031_v31 = vsel %vm999_vm11, %v963_v24, %v1015_v26  ;;  %v1043_v32 = vpack.c.bf16 %v1033_v28, %v1032_v27 }
 0x35f   : > { %v984_v33 = vadd.f32 %v1552_v29, %v2196_v42  ;;  %v975_v34 = vpop.f32.mrb[29].mxu0  ;;  %v1042_v35 = vpack.c.bf16 %v1031_v31, %v1030_v30 }
 0x360   : > { %v976_v36 = vadd.f32 %v2196_v42, %v975_v34  ;;  %v1553_v37 = vpop.f32.mrb[30].mxu0 }
 0x361   : > { %v1020_v38 = vmul.f32 0.01, %v984_v33  ;;  %v987_v39 = vadd.f32 %v1553_v37, %v2196_v42  ;;  %v978_v40 = vpop.f32.mrb[31].mxu0  ;;  %1578 = vmatprep.mubr.bf16.mxu1 %v1042_v35  ;;  %vm1004_vm12 = vcmp.gt.f32.partialorder %v984_v33, 0.0 }
 0x362   : > { %v1018_v41 = vmul.f32 0.01, %v976_v36  ;;  %v979_v43 = vadd.f32 %v2196_v42, %v978_v40  ;;  %1579 = vmatmul.mubr.bf16.gmra.mrb[24].mxu1 %v1043_v32  ;;  %vm1002_vm13 = vcmp.gt.f32.partialorder %v976_v36, 0.0  ;;  %v1382_v42 = vld [vmem:[%s2277_s8] ss:$0 sm:$0xff] }
 0x363   : > { %vm1005_vm14 = vcmp.gt.f32.partialorder %v987_v39, 0.0  ;;  %v1021_v44 = vmul.f32 0.01, %v987_v39  ;;  %v1036_v46 = vsel %vm1004_vm12, %v984_v33, %v1020_v38 }
 0x364   : > { %vm1003_vm15 = vcmp.gt.f32.partialorder %v979_v43, 0.0  ;;  %v1019_v45 = vmul.f32 0.01, %v979_v43  ;;  %v1034_v48 = vsel %vm1002_vm13, %v976_v36, %v1018_v41 }
 0x365   : > { %v1037_v47 = vsel %vm1005_vm14, %v987_v39, %v1021_v44 }
 0x366   : > { %v1035_v49 = vsel %vm1003_vm15, %v979_v43, %v1019_v45  ;;  %v1045_v50 = vpack.c.bf16 %v1037_v47, %v1036_v46 }
 0x367   : > { %v1044_v51 = vpack.c.bf16 %v1035_v49, %v1034_v48 }
 0x369   : > { %1582 = vmatprep.mubr.bf16.mxu1 %v1044_v51 }
 0x36a   : > { %1583 = vmatmul.mubr.bf16.gmra.mrb[28].mxu1 %v1045_v50 }
 0x425   : > { %v1572_v52 = vpop.f32.mrb[16].mxu1 }
 0x426   : > { %v1160_v53 = vadd.f32 %v1572_v52, %v1382_v42  ;;  %v1151_v54 = vpop.f32.mrb[17].mxu1 }
 0x427   : > { %v1152_v55 = vadd.f32 %v1382_v42, %v1151_v54  ;;  %v1573_v56 = vpop.f32.mrb[18].mxu1 }
 0x428   : > { %1217 = vst.msk [vmem:[%s2222_s13 + $0x10] sm:$0xff] %vm1214_vm0, %v1160_v53  ;;  %v1163_v57 = vadd.f32 %v1573_v56, %v1382_v42  ;;  %v1154_v58 = vpop.f32.mrb[19].mxu1 }
 0x429   : > { %1215 = vst.msk [vmem:[%s2222_s13] sm:$0xff] %vm1214_vm0, %v1152_v55  ;;  %v1155_v59 = vadd.f32 %v1382_v42, %v1154_v58 }
 0x42a   : > { %1218 = vst.msk [vmem:[%s2222_s13 + $0x18] sm:$0xff] %vm1214_vm0, %v1163_v57 }
 0x42b   : > { %1216 = vst.msk [vmem:[%s2222_s13 + $0x8] sm:$0xff] %vm1214_vm0, %v1155_v59 }
 0x42d   : > { %v1576_v60 = vpop.f32.mrb[20].mxu1 }
 0x42e   : > { %v1176_v61 = vadd.f32 %v1576_v60, %v1382_v42  ;;  %v1167_v62 = vpop.f32.mrb[21].mxu1 }
 0x42f   : > { %v1168_v63 = vadd.f32 %v1382_v42, %v1167_v62  ;;  %v1577_v0 = vpop.f32.mrb[22].mxu1 }
 0x430   : > { %1221 = vst.msk [vmem:[%s2222_s13 + $0x30] sm:$0xff] %vm1214_vm0, %v1176_v61  ;;  %v1179_v1 = vadd.f32 %v1577_v0, %v1382_v42  ;;  %v1170_v2 = vpop.f32.mrb[23].mxu1 }
 0x431   : > { %1219 = vst.msk [vmem:[%s2222_s13 + $0x20] sm:$0xff] %vm1214_vm0, %v1168_v63  ;;  %v1171_v3 = vadd.f32 %v1382_v42, %v1170_v2 }
 0x432   : > { %1222 = vst.msk [vmem:[%s2222_s13 + $0x38] sm:$0xff] %vm1214_vm0, %v1179_v1 }
 0x433   : > { %1220 = vst.msk [vmem:[%s2222_s13 + $0x28] sm:$0xff] %vm1214_vm0, %v1171_v3 }
 0x435   : > { %v1580_v4 = vpop.f32.mrb[24].mxu1 }
 0x436   : > { %v1192_v5 = vadd.f32 %v1580_v4, %v1382_v42  ;;  %v1183_v6 = vpop.f32.mrb[25].mxu1 }
 0x437   : > { %v1184_v7 = vadd.f32 %v1382_v42, %v1183_v6  ;;  %v1581_v8 = vpop.f32.mrb[26].mxu1 }
 0x438   : > { %1225 = vst.msk [vmem:[%s2222_s13 + $0x50] sm:$0xff] %vm1214_vm0, %v1192_v5  ;;  %v1195_v9 = vadd.f32 %v1581_v8, %v1382_v42  ;;  %v1186_v10 = vpop.f32.mrb[27].mxu1 }
 0x439   : > { %1223 = vst.msk [vmem:[%s2222_s13 + $0x40] sm:$0xff] %vm1214_vm0, %v1184_v7  ;;  %v1187_v11 = vadd.f32 %v1382_v42, %v1186_v10 }
 0x43a   : > { %1226 = vst.msk [vmem:[%s2222_s13 + $0x58] sm:$0xff] %vm1214_vm0, %v1195_v9 }
 0x43b   : > { %1224 = vst.msk [vmem:[%s2222_s13 + $0x48] sm:$0xff] %vm1214_vm0, %v1187_v11 }
 0x43d   : > { %v1584_v12 = vpop.f32.mrb[28].mxu1 }
 0x43e   : > { %v1208_v13 = vadd.f32 %v1584_v12, %v1382_v42  ;;  %v1199_v14 = vpop.f32.mrb[29].mxu1 }
 0x43f   : > { %v1200_v15 = vadd.f32 %v1382_v42, %v1199_v14  ;;  %v1585_v16 = vpop.f32.mrb[30].mxu1 }
 0x440   : > { %1229 = vst.msk [vmem:[%s2222_s13 + $0x70] sm:$0xff] %vm1214_vm0, %v1208_v13  ;;  %v1211_v17 = vadd.f32 %v1585_v16, %v1382_v42  ;;  %v1202_v18 = vpop.f32.mrb[31].mxu1 }
 0x441   : > { %1227 = vst.msk [vmem:[%s2222_s13 + $0x60] sm:$0xff] %vm1214_vm0, %v1200_v15  ;;  %v1203_v19 = vadd.f32 %v1382_v42, %v1202_v18 }
 0x442   : > { %1230 = vst.msk [vmem:[%s2222_s13 + $0x78] sm:$0xff] %vm1214_vm0, %v1211_v17 }
 0x443   : > { %1228 = vst.msk [vmem:[%s2222_s13 + $0x68] sm:$0xff] %vm1214_vm0, %v1203_v19 }
 0x444 PF: > { %p21_p11 = scmp.ge.s32.totalorder %s2101_s29, 4   ;;  %s2296_s30 = smov %s1878_s10 }
 0x445   : > { %s2297_s10 = smov %s1882_s11  ;;  %s2298_s11 = smov %s2112_s27 }
 0x446   : > { %s2299_s12 = smov %s2101_s29  ;;  %23 = sbr.rel (!%p21_p11) target bundleno = 7 (0x7), region = 112 }
 0x44d   :  { %1253 = vsyncpa [#allocation3], 1 }
 0x44e   :  { %1255 = vsyncpa [#allocation3 + $0x1], 1 }
 0x44f   :  { %1256 = vsyncpa [#allocation5], 1 }
 0x450   :  { %1257 = vsyncpa [#allocation8], 1 }

</bundles_post_ra>
